<compile_context>
chip_gen: v7x
topology: tpu7x:2x2x1
jax: 0.10.0
libtpu: 0.0.40
codegen_flags: <defaults>
</compile_context>

<pallas_src>
import functools

import jax
import jax.numpy as jnp
import numpy as np
from jax.experimental import pallas as pl
from jax.experimental.pallas import tpu as pltpu

LANES = 128  # lane-dense width used for the padded inputs / weights / output


# ----------------------------- Pallas kernel --------------------------------
def _awp_sac_actor_kernel(obs_ref, noise_ref, w_ref, o_ref, *,
                          action_dim, log_std_min, log_std_max):
    A = action_dim
    x = obs_ref[...]        # (B, 128): obs in lanes 0:obs_dim, carrier 1.0 at lane 127
    noise = noise_ref[...]  # (B, 128): trunk noise in 0:A, proxy noise in A:2A, 0 else

    # Block-diagonal fused trunk+proxy layers; bias folded in via carrier lane.
    h = jnp.maximum(jnp.dot(x, w_ref[0], preferred_element_type=jnp.float32), 0.0)
    h = jnp.maximum(jnp.dot(h, w_ref[1], preferred_element_type=jnp.float32), 0.0)
    h = jnp.maximum(jnp.dot(h, w_ref[2], preferred_element_type=jnp.float32), 0.0)
    mu = jnp.dot(h, w_ref[3], preferred_element_type=jnp.float32)       # lanes 0:2A
    log_std = jnp.dot(h, w_ref[4], preferred_element_type=jnp.float32)  # lanes 0:2A

    # log_std squashing / rescaling
    log_std = jnp.tanh(log_std)
    log_std = log_std_min + 0.5 * (log_std_max - log_std_min) * (log_std + 1.0)

    # reparameterized sample (compute_pi=True)
    std = jnp.exp(log_std)
    pi = mu + noise * std

    # squash
    mu_t = jnp.tanh(mu)
    pi_t = jnp.tanh(pi)

    # gaussian_logprob + tanh-squash correction, reduced per network via lane masks
    corr = jnp.log(jnp.maximum(1.0 - pi_t * pi_t, 0.0) + 1e-6)
    term = -0.5 * noise * noise - log_std - corr
    lane = jax.lax.broadcasted_iota(jnp.int32, term.shape, 1)
    zero = jnp.zeros_like(term)
    const = 0.5 * np.log(2.0 * np.pi) * A
    log_pi_a = jnp.sum(jnp.where(lane < A, term, zero),
                       axis=-1, keepdims=True) - const
    log_pi_b = jnp.sum(jnp.where((lane >= A) & (lane < 2 * A), term, zero),
                       axis=-1, keepdims=True) - const

    # Single unmasked 128-lane store:
    # [mu(2A) | pi(2A) | log_std(2A) | log_pi_trunk | log_pi_proxy | zeros]
    B = term.shape[0]
    pad = jnp.zeros((B, LANES - 6 * A - 2), jnp.float32)
    o_ref[...] = jnp.concatenate(
        [mu_t[:, :2 * A], pi_t[:, :2 * A], log_std[:, :2 * A],
         log_pi_a, log_pi_b, pad], axis=-1)


# ------------------------------- Wrapper -------------------------------------
def awp_sac_actor_forward(obs, noise2, w_slab, *, obs_dim, hidden_dim,
                          action_dim, log_std_min, log_std_max):
    """Fused forward of trunk (net 0) AND proxy_trunk (net 1) in one pallas_call.

    obs    : (B, obs_dim)  f32
    noise2 : (2, B, A)     f32  (independent randn per network)
    w_slab : (5, 128, 128) f32  (block-diagonal packed layers, bias folded in)

    Returns (mu, pi, log_pi, log_std), each with a leading axis of size 2
    (index 0 = trunk / proxy=False, index 1 = proxy_trunk / proxy=True).
    """
    del hidden_dim  # packing already happened in pack_weight_slab
    B = obs.shape[0]
    A = action_dim
    assert 6 * A + 2 <= LANES, "action_dim too large for single-slab packing"

    # Augmented obs: zeros beyond obs_dim, ones-carrier at lane 127 (bias folding).
    obs_aug = jnp.zeros((B, LANES), jnp.float32)
    obs_aug = obs_aug.at[:, :obs_dim].set(obs)
    obs_aug = obs_aug.at[:, LANES - 1].set(1.0)

    # Fused noise: trunk noise in lanes 0:A, proxy noise in lanes A:2A.
    noise_f = jnp.zeros((B, LANES), jnp.float32)
    noise_f = noise_f.at[:, 0:A].set(noise2[0])
    noise_f = noise_f.at[:, A:2 * A].set(noise2[1])

    kernel = functools.partial(
        _awp_sac_actor_kernel, action_dim=A,
        log_std_min=float(log_std_min), log_std_max=float(log_std_max))

    flops = 2 * B * LANES * LANES * 5
    transcendentals = 4 * B * LANES  # 2x tanh, exp, log per lane
    bytes_accessed = 4 * (3 * B * LANES + 5 * LANES * LANES)

    packed = pl.pallas_call(
        kernel,
        out_shape=jax.ShapeDtypeStruct((B, LANES), jnp.float32),
        in_specs=[
            pl.BlockSpec(memory_space=pltpu.MemorySpace.VMEM),  # obs_aug
            pl.BlockSpec(memory_space=pltpu.MemorySpace.VMEM),  # noise_f
            pl.BlockSpec(memory_space=pltpu.MemorySpace.VMEM),  # weight slab
        ],
        out_specs=pl.BlockSpec(memory_space=pltpu.MemorySpace.VMEM),
        cost_estimate=pl.CostEstimate(
            flops=int(flops),
            transcendentals=int(transcendentals),
            bytes_accessed=int(bytes_accessed),
        ),
    )(obs_aug, noise_f, w_slab)

    mu = jnp.stack([packed[:, 0:A], packed[:, A:2 * A]])
    pi = jnp.stack([packed[:, 2 * A:3 * A], packed[:, 3 * A:4 * A]])
    log_std = jnp.stack([packed[:, 4 * A:5 * A], packed[:, 5 * A:6 * A]])
    log_pi = jnp.stack([packed[:, 6 * A:6 * A + 1], packed[:, 6 * A + 1:6 * A + 2]])
    return mu, pi, log_pi, log_std


# ---------------------- deterministic parameter setup ------------------------
def init_trunk_params(key, obs_dim, hidden_dim, action_dim):
    """Deterministic synthetic init, (in, out) layout (torch Linear transposed)."""
    dims = [(obs_dim, hidden_dim), (hidden_dim, hidden_dim),
            (hidden_dim, hidden_dim), (hidden_dim, 2 * action_dim)]
    params = {}
    for i, (din, dout) in enumerate(dims, start=1):
        key, kw, kb = jax.random.split(key, 3)
        params[f"w{i}"] = jax.random.normal(kw, (din, dout), jnp.float32) * 0.1
        params[f"b{i}"] = jax.random.normal(kb, (1, dout), jnp.float32) * 0.01
    return params, key


def pack_weight_slab(pa, pb, obs_dim, hidden_dim, action_dim):
    """Pack trunk (pa) and proxy_trunk (pb) into a (5, 128, 128) slab.

    Plane 0: layer1 (shared input -> column concat), planes 1-2: layers 2-3
    (block diagonal), plane 3: mu head, plane 4: log_std head.
    Biases live in weight row 127; the ones-carrier (lane 127) is propagated
    through the ReLU layers via W[127, 127] = 1.
    """
    H, A, L = hidden_dim, action_dim, LANES
    slab = np.zeros((5, L, L), np.float32)

    # layer 1 (input is the shared obs, occupying rows 0:obs_dim)
    slab[0, :obs_dim, 0:H] = np.asarray(pa["w1"])
    slab[0, :obs_dim, H:2 * H] = np.asarray(pb["w1"])
    slab[0, L - 1, 0:H] = np.asarray(pa["b1"])[0]
    slab[0, L - 1, H:2 * H] = np.asarray(pb["b1"])[0]
    slab[0, L - 1, L - 1] = 1.0  # propagate ones carrier

    # layers 2, 3 (block diagonal over the fused hidden lanes)
    for plane, name in ((1, "2"), (2, "3")):
        slab[plane, 0:H, 0:H] = np.asarray(pa[f"w{name}"])
        slab[plane, H:2 * H, H:2 * H] = np.asarray(pb[f"w{name}"])
        slab[plane, L - 1, 0:H] = np.asarray(pa[f"b{name}"])[0]
        slab[plane, L - 1, H:2 * H] = np.asarray(pb[f"b{name}"])[0]
        slab[plane, L - 1, L - 1] = 1.0

    # mu head (plane 3) and log_std head (plane 4)
    slab[3, 0:H, 0:A] = np.asarray(pa["w4"])[:, :A]
    slab[3, H:2 * H, A:2 * A] = np.asarray(pb["w4"])[:, :A]
    slab[3, L - 1, 0:A] = np.asarray(pa["b4"])[0, :A]
    slab[3, L - 1, A:2 * A] = np.asarray(pb["b4"])[0, :A]

    slab[4, 0:H, 0:A] = np.asarray(pa["w4"])[:, A:]
    slab[4, H:2 * H, A:2 * A] = np.asarray(pb["w4"])[:, A:]
    slab[4, L - 1, 0:A] = np.asarray(pa["b4"])[0, A:]
    slab[4, L - 1, A:2 * A] = np.asarray(pb["b4"])[0, A:]
    return jnp.asarray(slab)


# --------------------------- pure-JAX reference -------------------------------
def sac_actor_forward_ref(obs, params, noise, *, log_std_min, log_std_max):
    h = jnp.maximum(obs @ params["w1"] + params["b1"], 0.0)
    h = jnp.maximum(h @ params["w2"] + params["b2"], 0.0)
    h = jnp.maximum(h @ params["w3"] + params["b3"], 0.0)
    out = h @ params["w4"] + params["b4"]
    A = noise.shape[-1]
    mu, log_std = out[:, :A], out[:, A:]
    log_std = jnp.tanh(log_std)
    log_std = log_std_min + 0.5 * (log_std_max - log_std_min) * (log_std + 1)
    std = jnp.exp(log_std)
    pi = mu + noise * std
    log_pi = jnp.sum(-0.5 * noise ** 2 - log_std, -1, keepdims=True) \
        - 0.5 * np.log(2.0 * np.pi) * A
    mu_t, pi_t = jnp.tanh(mu), jnp.tanh(pi)
    log_pi = log_pi - jnp.sum(jnp.log(jnp.maximum(1.0 - pi_t ** 2, 0.0) + 1e-6),
                              -1, keepdims=True)
    return mu_t, pi_t, log_pi, log_std


# ---------------------------------- main --------------------------------------
if __name__ == "__main__":
    OBS_DIM = 16
    ACTION_DIM = 4
    HIDDEN_DIM = 32
    LOG_STD_MIN = -10.0
    LOG_STD_MAX = 2.0
    BATCH = 8  # call-site note: larger batches (128+) amortize the fixed call cost
    # awp_coeff / perturb / restore operate on parameters only, not the forward pass.

    key = jax.random.PRNGKey(0)
    trunk_params, key = init_trunk_params(key, OBS_DIM, HIDDEN_DIM, ACTION_DIM)
    proxy_params, key = init_trunk_params(key, OBS_DIM, HIDDEN_DIM, ACTION_DIM)

    key, k_obs, k_noise = jax.random.split(key, 3)
    obs = jax.random.normal(k_obs, (BATCH, OBS_DIM), jnp.float32)
    noise2 = jax.random.normal(k_noise, (2, BATCH, ACTION_DIM), jnp.float32)

    # Pack both networks into the single lane-aligned block-diagonal slab.
    w_slab = pack_weight_slab(trunk_params, proxy_params,
                              OBS_DIM, HIDDEN_DIM, ACTION_DIM)

    # Single fused single-grid-step launch covering proxy=False and proxy=True.
    mu, pi, log_pi, log_std = awp_sac_actor_forward(
        obs, noise2, w_slab,
        obs_dim=OBS_DIM, hidden_dim=HIDDEN_DIM, action_dim=ACTION_DIM,
        log_std_min=LOG_STD_MIN, log_std_max=LOG_STD_MAX,
    )
    jax.block_until_ready((mu, pi, log_pi, log_std))

    # correctness check against pure-JAX reference (both networks)
    for net_idx, params in enumerate((trunk_params, proxy_params)):
        ref = sac_actor_forward_ref(
            obs, params, noise2[net_idx],
            log_std_min=LOG_STD_MIN, log_std_max=LOG_STD_MAX)
        got = (mu[net_idx], pi[net_idx], log_pi[net_idx], log_std[net_idx])
        for g, w in zip(got, ref):
            np.testing.assert_allclose(np.asarray(g), np.asarray(w),
                                       rtol=1e-4, atol=1e-5)

    print("KERNEL_OK")
</pallas_src>

<mosaic_0001>
module attributes {stable_mosaic.version = 11 : i64} {
  func.func @_awp_sac_actor_kernel(%arg0: memref<8x128xf32, #tpu.memory_space<vmem>>, %arg1: memref<8x128xf32, #tpu.memory_space<vmem>>, %arg2: memref<5x128x128xf32, #tpu.memory_space<vmem>>, %arg3: memref<8x128xf32, #tpu.memory_space<vmem>>) attributes {dimension_semantics = [], scalar_prefetch = 0 : i64, scratch_operands = 0 : i64, tpu.core_type = #tpu.core_type<tc>} {
    %c0 = arith.constant 0 : index
    %c0_0 = arith.constant 0 : index
    %0 = vector.load %arg0[%c0, %c0_0] : memref<8x128xf32, #tpu.memory_space<vmem>>, vector<8x128xf32>
    %c0_1 = arith.constant 0 : index
    %c0_2 = arith.constant 0 : index
    %1 = vector.load %arg1[%c0_1, %c0_2] : memref<8x128xf32, #tpu.memory_space<vmem>>, vector<8x128xf32>
    %c0_3 = arith.constant 0 : index
    %c0_4 = arith.constant 0 : index
    %c0_5 = arith.constant 0 : index
    %2 = vector.load %arg2[%c0_3, %c0_4, %c0_5] : memref<5x128x128xf32, #tpu.memory_space<vmem>>, vector<1x128x128xf32>
    %3 = vector.shape_cast %2 : vector<1x128x128xf32> to vector<128x128xf32>
    %cst = arith.constant dense<0.000000e+00> : vector<8x128xf32>
    %4 = tpu.matmul %0, %3, %cst {dimension_numbers = #tpu.dot_dimension_numbers<[1], [0], [0], [1], [0, 0, 1, 1], [], []>} : vector<8x128xf32>, vector<128x128xf32>, vector<8x128xf32> -> vector<8x128xf32>
    %cst_6 = arith.constant 0.000000e+00 : f32
    %5 = vector.broadcast %cst_6 : f32 to vector<8x128xf32>
    %6 = arith.maximumf %4, %5 : vector<8x128xf32>
    %c1 = arith.constant 1 : index
    %c0_7 = arith.constant 0 : index
    %c0_8 = arith.constant 0 : index
    %7 = vector.load %arg2[%c1, %c0_7, %c0_8] : memref<5x128x128xf32, #tpu.memory_space<vmem>>, vector<1x128x128xf32>
    %8 = vector.shape_cast %7 : vector<1x128x128xf32> to vector<128x128xf32>
    %cst_9 = arith.constant dense<0.000000e+00> : vector<8x128xf32>
    %9 = tpu.matmul %6, %8, %cst_9 {dimension_numbers = #tpu.dot_dimension_numbers<[1], [0], [0], [1], [0, 0, 1, 1], [], []>} : vector<8x128xf32>, vector<128x128xf32>, vector<8x128xf32> -> vector<8x128xf32>
    %cst_10 = arith.constant 0.000000e+00 : f32
    %10 = vector.broadcast %cst_10 : f32 to vector<8x128xf32>
    %11 = arith.maximumf %9, %10 : vector<8x128xf32>
    %c2 = arith.constant 2 : index
    %c0_11 = arith.constant 0 : index
    %c0_12 = arith.constant 0 : index
    %12 = vector.load %arg2[%c2, %c0_11, %c0_12] : memref<5x128x128xf32, #tpu.memory_space<vmem>>, vector<1x128x128xf32>
    %13 = vector.shape_cast %12 : vector<1x128x128xf32> to vector<128x128xf32>
    %cst_13 = arith.constant dense<0.000000e+00> : vector<8x128xf32>
    %14 = tpu.matmul %11, %13, %cst_13 {dimension_numbers = #tpu.dot_dimension_numbers<[1], [0], [0], [1], [0, 0, 1, 1], [], []>} : vector<8x128xf32>, vector<128x128xf32>, vector<8x128xf32> -> vector<8x128xf32>
    %cst_14 = arith.constant 0.000000e+00 : f32
    %15 = vector.broadcast %cst_14 : f32 to vector<8x128xf32>
    %16 = arith.maximumf %14, %15 : vector<8x128xf32>
    %c3 = arith.constant 3 : index
    %c0_15 = arith.constant 0 : index
    %c0_16 = arith.constant 0 : index
    %17 = vector.load %arg2[%c3, %c0_15, %c0_16] : memref<5x128x128xf32, #tpu.memory_space<vmem>>, vector<1x128x128xf32>
    %18 = vector.shape_cast %17 : vector<1x128x128xf32> to vector<128x128xf32>
    %cst_17 = arith.constant dense<0.000000e+00> : vector<8x128xf32>
    %19 = tpu.matmul %16, %18, %cst_17 {dimension_numbers = #tpu.dot_dimension_numbers<[1], [0], [0], [1], [0, 0, 1, 1], [], []>} : vector<8x128xf32>, vector<128x128xf32>, vector<8x128xf32> -> vector<8x128xf32>
    %c4 = arith.constant 4 : index
    %c0_18 = arith.constant 0 : index
    %c0_19 = arith.constant 0 : index
    %20 = vector.load %arg2[%c4, %c0_18, %c0_19] : memref<5x128x128xf32, #tpu.memory_space<vmem>>, vector<1x128x128xf32>
    %21 = vector.shape_cast %20 : vector<1x128x128xf32> to vector<128x128xf32>
    %cst_20 = arith.constant dense<0.000000e+00> : vector<8x128xf32>
    %22 = tpu.matmul %16, %21, %cst_20 {dimension_numbers = #tpu.dot_dimension_numbers<[1], [0], [0], [1], [0, 0, 1, 1], [], []>} : vector<8x128xf32>, vector<128x128xf32>, vector<8x128xf32> -> vector<8x128xf32>
    %23 = math.tanh %22 : vector<8x128xf32>
    %cst_21 = arith.constant 1.000000e+00 : f32
    %24 = vector.broadcast %cst_21 : f32 to vector<8x128xf32>
    %25 = arith.addf %23, %24 : vector<8x128xf32>
    %cst_22 = arith.constant 6.000000e+00 : f32
    %26 = vector.broadcast %cst_22 : f32 to vector<8x128xf32>
    %27 = arith.mulf %26, %25 : vector<8x128xf32>
    %cst_23 = arith.constant -1.000000e+01 : f32
    %28 = vector.broadcast %cst_23 : f32 to vector<8x128xf32>
    %29 = arith.addf %28, %27 : vector<8x128xf32>
    %30 = math.exp %29 : vector<8x128xf32>
    %31 = arith.mulf %1, %30 : vector<8x128xf32>
    %32 = arith.addf %19, %31 : vector<8x128xf32>
    %33 = math.tanh %19 : vector<8x128xf32>
    %34 = math.tanh %32 : vector<8x128xf32>
    %35 = arith.mulf %34, %34 : vector<8x128xf32>
    %cst_24 = arith.constant 1.000000e+00 : f32
    %36 = vector.broadcast %cst_24 : f32 to vector<8x128xf32>
    %37 = arith.subf %36, %35 : vector<8x128xf32>
    %cst_25 = arith.constant 0.000000e+00 : f32
    %38 = vector.broadcast %cst_25 : f32 to vector<8x128xf32>
    %39 = arith.maximumf %37, %38 : vector<8x128xf32>
    %cst_26 = arith.constant 9.99999997E-7 : f32
    %40 = vector.broadcast %cst_26 : f32 to vector<8x128xf32>
    %41 = arith.addf %39, %40 : vector<8x128xf32>
    %42 = math.log %41 : vector<8x128xf32>
    %cst_27 = arith.constant -5.000000e-01 : f32
    %43 = vector.broadcast %cst_27 : f32 to vector<8x128xf32>
    %44 = arith.mulf %43, %1 : vector<8x128xf32>
    %45 = arith.mulf %44, %1 : vector<8x128xf32>
    %46 = arith.subf %45, %29 : vector<8x128xf32>
    %47 = arith.subf %46, %42 : vector<8x128xf32>
    %48 = tpu.iota {dimensions = array<i32: 1>} : vector<8x128xi32>
    %cst_28 = arith.constant 0.000000e+00 : f32
    %49 = vector.broadcast %cst_28 : f32 to vector<8x128xf32>
    %c4_i32 = arith.constant 4 : i32
    %50 = vector.broadcast %c4_i32 : i32 to vector<8x128xi32>
    %51 = arith.cmpi slt, %48, %50 : vector<8x128xi32>
    %52 = arith.select %51, %47, %49 : vector<8x128xi1>, vector<8x128xf32>
    %cst_29 = arith.constant dense<0.000000e+00> : vector<8xf32>
    %53 = vector.multi_reduction <add>, %52, %cst_29 [1] : vector<8x128xf32> to vector<8xf32>
    %54 = vector.shape_cast %53 : vector<8xf32> to vector<8x1xf32>
    %cst_30 = arith.constant 3.67575407 : f32
    %55 = vector.broadcast %cst_30 : f32 to vector<8x1xf32>
    %56 = arith.subf %54, %55 : vector<8x1xf32>
    %c4_i32_31 = arith.constant 4 : i32
    %57 = vector.broadcast %c4_i32_31 : i32 to vector<8x128xi32>
    %58 = arith.cmpi sge, %48, %57 : vector<8x128xi32>
    %c8_i32 = arith.constant 8 : i32
    %59 = vector.broadcast %c8_i32 : i32 to vector<8x128xi32>
    %60 = arith.cmpi slt, %48, %59 : vector<8x128xi32>
    %61 = arith.andi %58, %60 : vector<8x128xi1>
    %62 = arith.select %61, %47, %49 : vector<8x128xi1>, vector<8x128xf32>
    %cst_32 = arith.constant dense<0.000000e+00> : vector<8xf32>
    %63 = vector.multi_reduction <add>, %62, %cst_32 [1] : vector<8x128xf32> to vector<8xf32>
    %64 = vector.shape_cast %63 : vector<8xf32> to vector<8x1xf32>
    %cst_33 = arith.constant 3.67575407 : f32
    %65 = vector.broadcast %cst_33 : f32 to vector<8x1xf32>
    %66 = arith.subf %64, %65 : vector<8x1xf32>
    %cst_34 = arith.constant 0.000000e+00 : f32
    %67 = vector.broadcast %cst_34 : f32 to vector<8x102xf32>
    %68 = vector.extract_strided_slice %33 {offsets = [0, 0], sizes = [8, 8], strides = [1, 1]} : vector<8x128xf32> to vector<8x8xf32>
    %69 = vector.extract_strided_slice %34 {offsets = [0, 0], sizes = [8, 8], strides = [1, 1]} : vector<8x128xf32> to vector<8x8xf32>
    %70 = vector.extract_strided_slice %29 {offsets = [0, 0], sizes = [8, 8], strides = [1, 1]} : vector<8x128xf32> to vector<8x8xf32>
    %71 = tpu.concatenate %68, %69, %70, %56, %66, %67 in 1 : vector<8x8xf32>, vector<8x8xf32>, vector<8x8xf32>, vector<8x1xf32>, vector<8x1xf32>, vector<8x102xf32> -> vector<8x128xf32>
    %c0_35 = arith.constant 0 : index
    %c0_36 = arith.constant 0 : index
    %72 = vector.load %arg3[%c0_35, %c0_36] : memref<8x128xf32, #tpu.memory_space<vmem>>, vector<8x128xf32>
    tpu.vector_store %arg3[%c0_35, %c0_36], %71 {strides = array<i32>} : memref<8x128xf32, #tpu.memory_space<vmem>>, vector<8x128xf32>,
    return
  }
}

</mosaic_0001>

<bundles_post_ra>
// kernel: tpu_custom_call.1
= control target key start
LH: loop header
LB: loop body
LE: loop exit
PB: predicated region body
PF: predicated region fallthrough
CT: control target
= control target key end

     0   :  { %8 = vsyncpa [#allocation3], 0  ;;  %s1186_s0 = inlined_call_operand.hbm [shape: f32[8,128], index: 0, kind: input, shape index: {}]   ;;  %s1187_s1 = inlined_call_operand.hbm [shape: f32[8,128], index: 1, kind: input, shape index: {}]   ;;  %s1188_s2 = inlined_call_operand.hbm [shape: f32[5,128,128], index: 2, kind: input, shape index: {}]   ;;  %s1189_s3 = inlined_call_operand.hbm [shape: f32[8,128], index: 3, kind: output, shape index: {}]  }
   0x1   :  { %9 = vsyncpa [#allocation6], 0 }
   0x2   :  { %10 = vsyncpa [#allocation4], 0  ;;  %s1056_s12 = smov [#allocation5]   ;;  %s1057_s14 = smov [#allocation2]  }
   0x3   :  { %s27_s13 = sshll.u32 %s1056_s12, 4  ;;  %s17_s15 = sshll.u32 %s1057_s14, 4  ;;  %s28_s13 = int_to_ptr.vmem [resolvable:$true] %s27_s13  ;;  %s18_s15 = int_to_ptr.vmem [resolvable:$true] %s17_s15 }
   0x4   :  { %s962_s18 = scalar_lea.hbm %s1187_s1, 128 }
   0x5   :  { %p963_p0 = scmp.ne.s32.totalorder %s1187_s1, %s962_s18  ;;  %p966_p1 = scmp.lt.u32.totalorder %s962_s18, %s1187_s1 }
   0x7   :  { %p968_p2 = pnand %p966_p1, %p963_p0 }
   0x9   :  { %971 = shalt.err (!%p968_p2)
}
   0xa   :  { %s972_s23 = scalar_lea.vmem %s28_s13, 128  ;;  %p977_p4 = scmp.lt.s32.totalorder %s28_s13, %s28_s13 }
   0xb   :  { %p973_p3 = scmp.ne.s32.totalorder %s28_s13, %s972_s23  ;;  %p978_p5 = scmp.lt.s32.totalorder %s972_s23, %s972_s23 }
   0xd   :  { %p979_p6 = por %p978_p5, %p977_p4 }
   0xf   :  { %p980_p7 = pnand %p979_p6, %p973_p3 }
  0x11   :  { %983 = shalt.err (!%p980_p7)
}
  0x12   :  { %30 = dma.hbm_to_vmem [thread:$0]  %s1187_s1, 128, %s28_s13, [#allocation6]  }
  0x13   :  { %s984_s28 = scalar_lea.hbm %s1186_s0, 128 }
  0x14   :  { %p985_p8 = scmp.ne.s32.totalorder %s1186_s0, %s984_s28  ;;  %p988_p9 = scmp.lt.u32.totalorder %s984_s28, %s1186_s0 }
  0x16   :  { %p990_p10 = pnand %p988_p9, %p985_p8 }
  0x18   :  { %993 = shalt.err (!%p990_p10)
}
  0x19   :  { %s994_s6 = scalar_lea.vmem %s18_s15, 128  ;;  %p999_p12 = scmp.lt.s32.totalorder %s18_s15, %s18_s15 }
  0x1a   :  { %p995_p11 = scmp.ne.s32.totalorder %s18_s15, %s994_s6  ;;  %p1000_p13 = scmp.lt.s32.totalorder %s994_s6, %s994_s6 }
  0x1c   :  { %p1001_p0 = por %p1000_p13, %p999_p12 }
  0x1e   :  { %p1002_p1 = pnand %p1001_p0, %p995_p11 }
  0x20   :  { %1005 = shalt.err (!%p1002_p1)
}
  0x21   :  { %20 = dma.hbm_to_vmem [thread:$0]  %s1186_s0, 128, %s18_s15, [#allocation3]  }
  0x22   :  { %s1058_s8 = smov [#allocation7]   ;;  %s1006_s12 = scalar_lea.hbm %s1188_s2, 10240 }
  0x23   :  { %s36_s9 = sshll.u32 %s1058_s8, 4  ;;  %p1007_p2 = scmp.ne.s32.totalorder %s1188_s2, %s1006_s12  ;;  %s37_s9 = int_to_ptr.vmem [resolvable:$true] %s36_s9 }
  0x24   :  { %p1010_p3 = scmp.lt.u32.totalorder %s1006_s12, %s1188_s2 }
  0x26   :  { %p1012_p4 = pnand %p1010_p3, %p1007_p2 }
  0x28   :  { %1015 = shalt.err (!%p1012_p4)
}
  0x29   :  { %s1016_s18 = scalar_lea.vmem %s37_s9, 10240  ;;  %p1021_p6 = scmp.lt.s32.totalorder %s37_s9, %s37_s9 }
  0x2a   :  { %p1017_p5 = scmp.ne.s32.totalorder %s37_s9, %s1016_s18  ;;  %p1022_p7 = scmp.lt.s32.totalorder %s1016_s18, %s1016_s18 }
  0x2c   :  { %p1023_p8 = por %p1022_p7, %p1021_p6 }
  0x2e   :  { %p1024_p9 = pnand %p1023_p8, %p1017_p5 }
  0x30   :  { %1027 = shalt.err (!%p1024_p9)
}
  0x31   :  { %s1059_s0 = smov 128   ;;  %s1060_s15 = smov 8  }
  0x32   :  { %42 = dma.hbm_to_vmem [thread:$0]  %s1188_s2, 10240, %s37_s9, [#allocation6], %s1059_s0, %s1059_s0, %s1060_s15  }
  0x33   :  { %1050 = dma.done.wait [#allocation3], 128  }
  0x34   :  { %1051 = vsyncadd [#allocation3], 4294967168 }
  0x35   :  { %1052 = dma.done.wait [#allocation6], 10368  }
  0x36   :  { %1053 = vsyncadd [#allocation6], 4294956928  ;;  %v1061_v0 = vmov 0.0|0.0   ;;  %vm1062_vm0 = vmmov 0   ;;  %v1063_v1 = vmov 0.0   ;;  %v54_v2 = vld [vmem:[#allocation7] sm:$0xff] }
  0x37   :  { %822 = vmatprep.subr.bf16.mxu0 %v1061_v0  ;;  %679 = vmatprep.mubr.msk.f32.mxu0 %vm1062_vm0, %v1063_v1  ;;  %v55_v3 = vld [vmem:[#allocation7 + $0x8] sm:$0xff]  ;;  %v56_v4 = vld [vmem:[#allocation7 + $0x10] sm:$0xff]  ;;  %v57_v6 = vld [vmem:[#allocation7 + $0x18] sm:$0xff]  ;;  %s1064_s2 = smov 16   ;;  %vm533_vm5 = vcmask 64512   ;;  %vm535_vm6 = vcmask 130048  }
  0x38   :  { %846 = vmatprep.subr.bf16.mxu1 %v1061_v0  ;;  %714 = vmatprep.mubr.msk.f32.mxu1 %vm1062_vm0, %v1063_v1  ;;  %v823_v5 = vpack.c.bf16 %v55_v3, %v54_v2  ;;  %v826_v7 = vpack.c.bf16 %v57_v6, %v56_v4  ;;  %v58_v8 = vld [vmem:[#allocation7 + $0x20] sm:$0xff]  ;;  %v59_v9 = vld [vmem:[#allocation7 + $0x28] sm:$0xff]  ;;  %v144_v12 = vld [vmem:[#allocation7 + $0x90] sm:$0xff]  ;;  %vm537_vm7 = vcmask 195584   ;;  %vm539_vm8 = vcmask 203776   ;;  %s1065_s21 = smov [#allocation8]  }
  0x39   :  { %v142_v10 = vld [vmem:[#allocation7 + $0x80] sm:$0xff]  ;;  %v143_v11 = vld [vmem:[#allocation7 + $0x88] sm:$0xff]  ;;  %v145_v13 = vld [vmem:[#allocation7 + $0x98] sm:$0xff]  ;;  %v829_v14 = vpack.c.bf16 %v59_v9, %v58_v8  ;;  %s550_s22 = sshll.u32 %s1065_s21, 4  ;;  %vm541_vm9 = vcmask 211968   ;;  %s551_s22 = int_to_ptr.vmem [resolvable:$true] %s550_s22 }
  0x3a   :  { %824 = vmatpush3.bf16.msra.mxu0 %v823_v5  ;;  %v847_v15 = vpack.c.bf16 %v143_v11, %v142_v10  ;;  %v60_v16 = vld [vmem:[#allocation7 + $0x30] sm:$0xff]  ;;  %v61_v17 = vld [vmem:[#allocation7 + $0x38] sm:$0xff]  ;;  %v850_v18 = vpack.c.bf16 %v145_v13, %v144_v12  ;;  %v146_v19 = vld [vmem:[#allocation7 + $0xa0] sm:$0xff]  ;;  %s1028_s23 = scalar_lea.vmem %s551_s22, 128  ;;  %p1033_p11 = scmp.lt.s32.totalorder %s551_s22, %s551_s22 }
  0x3b   :  { %825 = vmatprep.subr.bf16.mxu0 %v1061_v0  ;;  %v147_v20 = vld [vmem:[#allocation7 + $0xa8] sm:$0xff]  ;;  %v832_v21 = vpack.c.bf16 %v61_v17, %v60_v16  ;;  %v62_v22 = vld [vmem:[#allocation7 + $0x40] sm:$0xff]  ;;  %v148_v25 = vld [vmem:[#allocation7 + $0xb0] sm:$0xff]  ;;  %p1029_p10 = scmp.ne.s32.totalorder %s551_s22, %s1028_s23  ;;  %p1034_p12 = scmp.lt.s32.totalorder %s1028_s23, %s1028_s23 }
  0x3c   :  { %848 = vmatpush3.bf16.msra.mxu1 %v847_v15  ;;  %v63_v23 = vld [vmem:[#allocation7 + $0x48] sm:$0xff]  ;;  %v853_v24 = vpack.c.bf16 %v147_v20, %v146_v19  ;;  %v149_v26 = vld [vmem:[#allocation7 + $0xb8] sm:$0xff]  ;;  %v64_v28 = vld [vmem:[#allocation7 + $0x50] sm:$0xff] }
  0x3d   :  { %849 = vmatprep.subr.bf16.mxu1 %v1061_v0  ;;  %v835_v27 = vpack.c.bf16 %v63_v23, %v62_v22  ;;  %v65_v29 = vld [vmem:[#allocation7 + $0x58] sm:$0xff]  ;;  %v856_v30 = vpack.c.bf16 %v149_v26, %v148_v25  ;;  %v150_v31 = vld [vmem:[#allocation7 + $0xc0] sm:$0xff]  ;;  %v151_v32 = vld [vmem:[#allocation7 + $0xc8] sm:$0xff]  ;;  %p1035_p13 = por %p1034_p12, %p1033_p11 }
  0x3e   :  { %827 = vmatpush3.bf16.msra.mxu0 %v826_v7  ;;  %v838_v33 = vpack.c.bf16 %v65_v29, %v64_v28  ;;  %v66_v34 = vld [vmem:[#allocation7 + $0x60] sm:$0xff]  ;;  %v67_v35 = vld [vmem:[#allocation7 + $0x68] sm:$0xff]  ;;  %v859_v36 = vpack.c.bf16 %v151_v32, %v150_v31  ;;  %v152_v37 = vld [vmem:[#allocation7 + $0xd0] sm:$0xff] }
  0x3f   :  { %828 = vmatprep.subr.bf16.mxu0 %v1061_v0  ;;  %v153_v38 = vld [vmem:[#allocation7 + $0xd8] sm:$0xff]  ;;  %v841_v39 = vpack.c.bf16 %v67_v35, %v66_v34  ;;  %v68_v40 = vld [vmem:[#allocation7 + $0x70] sm:$0xff]  ;;  %v154_v43 = vld [vmem:[#allocation7 + $0xe0] sm:$0xff]  ;;  %p1036_p0 = pnand %p1035_p13, %p1029_p10 }
  0x40   :  { %851 = vmatpush3.bf16.msra.mxu1 %v850_v18  ;;  %v69_v41 = vld [vmem:[#allocation7 + $0x78] sm:$0xff]  ;;  %v862_v42 = vpack.c.bf16 %v153_v38, %v152_v37  ;;  %v155_v44 = vld [vmem:[#allocation7 + $0xe8] sm:$0xff]  ;;  %v52_v47 = vld [vmem:[#allocation2] sm:$0xff] }
  0x41   :  { %852 = vmatprep.subr.bf16.mxu1 %v1061_v0  ;;  %v844_v45 = vpack.c.bf16 %v69_v41, %v68_v40  ;;  %v865_v46 = vpack.c.bf16 %v155_v44, %v154_v43  ;;  %v156_v48 = vld [vmem:[#allocation7 + $0xf0] sm:$0xff]  ;;  %v157_v49 = vld [vmem:[#allocation7 + $0xf8] sm:$0xff]  ;;  %v230_v51 = vld [vmem:[#allocation7 + $0x100] sm:$0xff] }
  0x42   :  { %830 = vmatpush3.bf16.msra.mxu0 %v829_v14  ;;  %v868_v50 = vpack.c.bf16 %v157_v49, %v156_v48  ;;  %v231_v52 = vld [vmem:[#allocation7 + $0x108] sm:$0xff]  ;;  %v232_v53 = vld [vmem:[#allocation7 + $0x110] sm:$0xff]  ;;  %v233_v55 = vld [vmem:[#allocation7 + $0x118] sm:$0xff] }
  0x43   :  { %831 = vmatprep.subr.bf16.mxu0 %v1061_v0  ;;  %v871_v54 = vpack.c.bf16 %v231_v52, %v230_v51  ;;  %v874_v56 = vpack.c.bf16 %v233_v55, %v232_v53  ;;  %v234_v57 = vld [vmem:[#allocation7 + $0x120] sm:$0xff]  ;;  %v235_v58 = vld [vmem:[#allocation7 + $0x128] sm:$0xff]  ;;  %v236_v60 = vld [vmem:[#allocation7 + $0x130] sm:$0xff] }
  0x44   :  { %854 = vmatpush3.bf16.msra.mxu1 %v853_v24  ;;  %v877_v59 = vpack.c.bf16 %v235_v58, %v234_v57  ;;  %v237_v61 = vld [vmem:[#allocation7 + $0x138] sm:$0xff]  ;;  %v238_v63 = vld [vmem:[#allocation7 + $0x140] sm:$0xff]  ;;  %v239_v2 = vld [vmem:[#allocation7 + $0x148] sm:$0xff] }
  0x45   :  { %855 = vmatprep.subr.bf16.mxu1 %v1061_v0  ;;  %v880_v62 = vpack.c.bf16 %v237_v61, %v236_v60  ;;  %v883_v3 = vpack.c.bf16 %v239_v2, %v238_v63  ;;  %v240_v4 = vld [vmem:[#allocation7 + $0x150] sm:$0xff]  ;;  %v241_v5 = vld [vmem:[#allocation7 + $0x158] sm:$0xff]  ;;  %v242_v7 = vld [vmem:[#allocation7 + $0x160] sm:$0xff] }
  0x46   :  { %833 = vmatpush3.bf16.msra.mxu0 %v832_v21  ;;  %v886_v6 = vpack.c.bf16 %v241_v5, %v240_v4  ;;  %v243_v8 = vld [vmem:[#allocation7 + $0x168] sm:$0xff]  ;;  %v244_v13 = vld [vmem:[#allocation7 + $0x170] sm:$0xff]  ;;  %v245_v14 = vld [vmem:[#allocation7 + $0x178] sm:$0xff] }
  0x47   :  { %834 = vmatprep.subr.bf16.mxu0 %v1061_v0  ;;  %v889_v9 = vpack.c.bf16 %v243_v8, %v242_v7  ;;  %v892_v15 = vpack.c.bf16 %v245_v14, %v244_v13  ;;  %v318_v16 = vld [vmem:[#allocation7 + $0x180] sm:$0xff]  ;;  %v319_v17 = vld [vmem:[#allocation7 + $0x188] sm:$0xff]  ;;  %v320_v19 = vld [vmem:[#allocation7 + $0x190] sm:$0xff] }
  0x48   :  { %857 = vmatpush3.bf16.msra.mxu1 %v856_v30  ;;  %v895_v18 = vpack.c.bf16 %v319_v17, %v318_v16  ;;  %v321_v20 = vld [vmem:[#allocation7 + $0x198] sm:$0xff]  ;;  %v322_v22 = vld [vmem:[#allocation7 + $0x1a0] sm:$0xff]  ;;  %v323_v23 = vld [vmem:[#allocation7 + $0x1a8] sm:$0xff] }
  0x49   :  { %858 = vmatprep.subr.bf16.mxu1 %v1061_v0  ;;  %v898_v21 = vpack.c.bf16 %v321_v20, %v320_v19  ;;  %v901_v24 = vpack.c.bf16 %v323_v23, %v322_v22  ;;  %v324_v25 = vld [vmem:[#allocation7 + $0x1b0] sm:$0xff]  ;;  %v325_v26 = vld [vmem:[#allocation7 + $0x1b8] sm:$0xff]  ;;  %v326_v28 = vld [vmem:[#allocation7 + $0x1c0] sm:$0xff] }
  0x4a   :  { %836 = vmatpush3.bf16.msra.mxu0 %v835_v27  ;;  %v904_v27 = vpack.c.bf16 %v325_v26, %v324_v25  ;;  %v327_v29 = vld [vmem:[#allocation7 + $0x1c8] sm:$0xff]  ;;  %v328_v31 = vld [vmem:[#allocation7 + $0x1d0] sm:$0xff]  ;;  %v329_v32 = vld [vmem:[#allocation7 + $0x1d8] sm:$0xff]  ;;  %v511_v25 = vlaneseq }
  0x4b   :  { %837 = vmatprep.subr.bf16.mxu0 %v1061_v0  ;;  %v907_v30 = vpack.c.bf16 %v327_v29, %v326_v28  ;;  %v330_v34 = vld [vmem:[#allocation7 + $0x1e0] sm:$0xff]  ;;  %v331_v35 = vld [vmem:[#allocation7 + $0x1e8] sm:$0xff]  ;;  %v407_v43 = vld [vmem:[#allocation7 + $0x210] sm:$0xff] }
  0x4c   :  { %860 = vmatpush3.bf16.msra.mxu1 %v859_v36  ;;  %v913_v36 = vpack.c.bf16 %v331_v35, %v330_v34  ;;  %v405_v37 = vld [vmem:[#allocation7 + $0x200] sm:$0xff]  ;;  %v406_v38 = vld [vmem:[#allocation7 + $0x208] sm:$0xff]  ;;  %v408_v44 = vld [vmem:[#allocation7 + $0x218] sm:$0xff] }
  0x4d   :  { %861 = vmatprep.subr.bf16.mxu1 %v1061_v0  ;;  %v919_v40 = vpack.c.bf16 %v406_v38, %v405_v37  ;;  %v411_v49 = vld [vmem:[#allocation7 + $0x230] sm:$0xff]  ;;  %v413_v52 = vld [vmem:[#allocation7 + $0x240] sm:$0xff]  ;;  %v414_v53 = vld [vmem:[#allocation7 + $0x248] sm:$0xff] }
  0x4e   :  { %839 = vmatpush3.bf16.msra.mxu0 %v838_v33  ;;  %v910_v33 = vpack.c.bf16 %v329_v32, %v328_v31  ;;  %v416_v55 = vld [vmem:[#allocation7 + $0x258] sm:$0xff]  ;;  %v417_v57 = vld [vmem:[#allocation7 + $0x260] sm:$0xff]  ;;  %v418_v58 = vld [vmem:[#allocation7 + $0x268] sm:$0xff] }
  0x4f   :  { %840 = vmatprep.subr.bf16.mxu0 %v1061_v0  ;;  %v332_v60 = vld [vmem:[#allocation7 + $0x1f0] sm:$0xff]  ;;  %v333_v61 = vld [vmem:[#allocation7 + $0x1f8] sm:$0xff] }
  0x50   :  { %863 = vmatpush3.bf16.msra.mxu1 %v862_v42  ;;  %v916_v63 = vpack.c.bf16 %v333_v61, %v332_v60  ;;  %v420_v2 = vld [vmem:[#allocation7 + $0x278] sm:$0xff] }
  0x51   :  { %864 = vmatprep.subr.bf16.mxu1 %v1061_v0  ;;  %v53_v16 = vld [vmem:[#allocation5] sm:$0xff] }
  0x52   :  { %842 = vmatpush3.bf16.msra.mxu0 %v841_v39 }
  0x53   :  { %843 = vmatprep.subr.bf16.mxu0 %v1061_v0 }
  0x54   :  { %866 = vmatpush3.bf16.msra.mxu1 %v865_v46  ;;  %v409_v46 = vld [vmem:[#allocation7 + $0x220] sm:$0xff] }
  0x55   :  { %867 = vmatprep.subr.bf16.mxu1 %v1061_v0 }
  0x56   :  { %845 = vmatpush3.bf16.msra.mxu0 %v844_v45  ;;  %v922_v45 = vpack.c.bf16 %v408_v44, %v407_v43 }
  0x57   :  { %870 = vmatprep.subr.bf16.mxu0 %v1061_v0 }
  0x58   :  { %869 = vmatpush3.bf16.msra.mxu1 %v868_v50  ;;  %v412_v50 = vld [vmem:[#allocation7 + $0x238] sm:$0xff] }
  0x59   :  { %680 = vmatmul.mubr.f32.vlgmr.msra.gmra.mrb[0].mxu0 %v52_v47  ;;  %894 = vmatprep.subr.bf16.mxu1 %v1061_v0  ;;  %v410_v47 = vld [vmem:[#allocation7 + $0x228] sm:$0xff]  ;;  %v928_v51 = vpack.c.bf16 %v412_v50, %v411_v49 }
  0x5a   :  { %749 = vmatprep.mubr.msk.f32.mxu0 %vm1062_vm0, %v1063_v1  ;;  %872 = vmatpush3.bf16.msra.mxu0 %v871_v54  ;;  %v925_v48 = vpack.c.bf16 %v410_v47, %v409_v46  ;;  %v931_v54 = vpack.c.bf16 %v414_v53, %v413_v52 }
  0x5b   :  { %873 = vmatprep.subr.bf16.mxu0 %v1061_v0 }
  0x5e   :  { %875 = vmatpush3.bf16.msra.mxu0 %v874_v56 }
  0x5f   :  { %876 = vmatprep.subr.bf16.mxu0 %v1061_v0 }
  0x62   :  { %878 = vmatpush3.bf16.msra.mxu0 %v877_v59  ;;  %v937_v59 = vpack.c.bf16 %v418_v58, %v417_v57 }
  0x63   :  { %879 = vmatprep.subr.bf16.mxu0 %v1061_v0 }
  0x66   :  { %881 = vmatpush3.bf16.msra.mxu0 %v880_v62  ;;  %v419_v62 = vld [vmem:[#allocation7 + $0x270] sm:$0xff] }
  0x67   :  { %882 = vmatprep.subr.bf16.mxu0 %v1061_v0 }
  0x6a   :  { %884 = vmatpush3.bf16.msra.mxu0 %v883_v3  ;;  %v940_v3 = vpack.c.bf16 %v420_v2, %v419_v62 }
  0x6b   :  { %885 = vmatprep.subr.bf16.mxu0 %v1061_v0 }
  0x6e   :  { %887 = vmatpush3.bf16.msra.mxu0 %v886_v6 }
  0x6f   :  { %888 = vmatprep.subr.bf16.mxu0 %v1061_v0 }
  0x72   :  { %890 = vmatpush3.bf16.msra.mxu0 %v889_v9 }
  0x73   :  { %891 = vmatprep.subr.bf16.mxu0 %v1061_v0 }
  0x76   :  { %893 = vmatpush3.bf16.msra.mxu0 %v892_v15 }
  0x77   :  { %918 = vmatprep.subr.bf16.mxu0 %v1061_v0 }
 0x12c   :  { %v136_v10 = vpop.f32.mrb[0].mxu0 }
 0x12d   :  { %v140_v11 = vmax.f32 %v136_v10, 0.0  ;;  %v681_v12 = vpop.f32.mrb[1].mxu0 }
 0x12f   :  { %715 = vmatmul.mubr.f32.vlgmr.msra.gmra.mrb[0].mxu1 %v140_v11 }
 0x130   :  { %784 = vmatprep.mubr.msk.f32.mxu1 %vm1062_vm0, %v1063_v1  ;;  %896 = vmatpush3.bf16.msra.mxu1 %v895_v18 }
 0x131   :  { %897 = vmatprep.subr.bf16.mxu1 %v1061_v0 }
 0x134   :  { %899 = vmatpush3.bf16.msra.mxu1 %v898_v21 }
 0x135   :  { %900 = vmatprep.subr.bf16.mxu1 %v1061_v0 }
 0x138   :  { %902 = vmatpush3.bf16.msra.mxu1 %v901_v24  ;;  %v507_v24 = vmul.f32 -0.5, %v53_v16 }
 0x139   :  { %903 = vmatprep.subr.bf16.mxu1 %v1061_v0 }
 0x13a   :  { %v508_v26 = vmul.f32 %v507_v24, %v53_v16 }
 0x13c   :  { %905 = vmatpush3.bf16.msra.mxu1 %v904_v27  ;;  %v512_v27 = vand.u32 127, %v511_v25 }
 0x13d   :  { %906 = vmatprep.subr.bf16.mxu1 %v1061_v0 }
 0x13e   :  { %vm513_vm1 = vcmp.lt.s32.totalorder %v512_v27, 4  ;;  %vm518_vm2 = vcmp.ge.s32.totalorder %v512_v27, 4  ;;  %vm519_vm3 = vcmp.lt.s32.totalorder %v512_v27, 8 }
 0x13f   :  { %vm520_vm4 = vmand %vm518_vm2, %vm519_vm3 }
 0x140   :  { %908 = vmatpush3.bf16.msra.mxu1 %v907_v30 }
 0x141   :  { %909 = vmatprep.subr.bf16.mxu1 %v1061_v0 }
 0x144   :  { %911 = vmatpush3.bf16.msra.mxu1 %v910_v33 }
 0x145   :  { %912 = vmatprep.subr.bf16.mxu1 %v1061_v0 }
 0x148   :  { %914 = vmatpush3.bf16.msra.mxu1 %v913_v36 }
 0x149   :  { %915 = vmatprep.subr.bf16.mxu1 %v1061_v0 }
 0x14c   :  { %917 = vmatpush3.bf16.msra.mxu1 %v916_v63 }
 0x202   :  { %v224_v39 = vpop.f32.mrb[0].mxu1 }
 0x203   :  { %v228_v41 = vmax.f32 %v224_v39, 0.0  ;;  %v716_v42 = vpop.f32.mrb[1].mxu1 }
 0x205   :  { %750 = vmatmul.mubr.f32.vlgmr.msra.gmra.mrb[2].mxu0 %v228_v41 }
 0x206   :  { %920 = vmatpush3.bf16.msra.mxu0 %v919_v40  ;;  %819 = vmatprep.mubr.msk.f32.mxu0 %vm1062_vm0, %v1063_v1  ;;  %v415_v1 = vld [vmem:[#allocation7 + $0x250] sm:$0xff] }
 0x207   :  { %921 = vmatprep.subr.bf16.mxu0 %v1061_v0  ;;  %v934_v56 = vpack.c.bf16 %v416_v55, %v415_v1 }
 0x20a   :  { %923 = vmatpush3.bf16.msra.mxu0 %v922_v45 }
 0x20b   :  { %924 = vmatprep.subr.bf16.mxu0 %v1061_v0 }
 0x20e   :  { %926 = vmatpush3.bf16.msra.mxu0 %v925_v48 }
 0x20f   :  { %927 = vmatprep.subr.bf16.mxu0 %v1061_v0 }
 0x212   :  { %929 = vmatpush3.bf16.msra.mxu0 %v928_v51 }
 0x213   :  { %930 = vmatprep.subr.bf16.mxu0 %v1061_v0 }
 0x216   :  { %932 = vmatpush3.bf16.msra.mxu0 %v931_v54 }
 0x217   :  { %933 = vmatprep.subr.bf16.mxu0 %v1061_v0 }
 0x21a   :  { %935 = vmatpush3.bf16.msra.mxu0 %v934_v56 }
 0x21b   :  { %936 = vmatprep.subr.bf16.mxu0 %v1061_v0 }
 0x21e   :  { %938 = vmatpush3.bf16.msra.mxu0 %v937_v59 }
 0x21f   :  { %939 = vmatprep.subr.bf16.mxu0 %v1061_v0 }
 0x222   :  { %941 = vmatpush3.bf16.msra.mxu0 %v940_v3 }
 0x2d8   :  { %v312_v4 = vpop.f32.mrb[2].mxu0 }
 0x2d9   :  { %v316_v5 = vmax.f32 %v312_v4, 0.0  ;;  %v751_v6 = vpop.f32.mrb[3].mxu0 }
 0x2db   :  { %785 = vmatmul.mubr.f32.vlgmr.msra.gmra.mrb[2].mxu1 %v316_v5  ;;  %820 = vmatmul.mubr.f32.vlgmr.msra.gmra.mrb[4].mxu0 %v316_v5 }
 0x3ae   :  { %v400_v7 = vpop.f32.mrb[2].mxu1  ;;  %v487_v8 = vpop.f32.mrb[4].mxu0 }
 0x3af   :  { %v786_v9 = vpop.f32.mrb[3].mxu1  ;;  %v821_v10 = vpop.f32.mrb[5].mxu0  ;;  %952 = vtanh.f32 %v487_v8 }
 0x3b9   :  { %v953_v11 = vpop.eup %952 }
 0x3ba   :  { %v492_v0 = vadd.f32 1.0, %v953_v11 }
 0x3bc   :  { %v493_v12 = vmul.f32 6.0, %v492_v0 }
 0x3be   :  { %v494_v13 = vadd.f32 -10.0, %v493_v12 }
 0x3c0   :  { %v495_v14 = vmul.f32 1.442695, %v494_v13  ;;  %v509_v30 = vsub.f32 %v508_v26, %v494_v13 }
 0x3c2   :  { %954 = vpow2.f32 %v495_v14 }
 0x3cc   :  { %v955_v15 = vpop.eup %954 }
 0x3cd   :  { %v497_v17 = vmul.f32 %v955_v15, %v53_v16 }
 0x3cf   :  { %v498_v18 = vadd.f32 %v497_v17, %v400_v7 }
 0x3d1   :  { %956 = vtanh.f32 %v498_v18 }
 0x3db   :  { %v957_v19 = vpop.eup %956 }
 0x3dc   :  { %526 = vrot.lane.b32.xlu1 %v957_v19, %s1060_s15  ;;  %v501_v20 = vmul.f32 %v957_v19, %v957_v19 }
 0x3de   :  { %v502_v21 = vsub.f32 1.0, %v501_v20 }
 0x3e0   :  { %530 = vrot.lane.b32.xlu1 %v494_v13, %s1064_s2  ;;  %v503_v22 = vmax.f32 %v502_v21, 0.0 }
 0x3e2   :  { %v504_v23 = vadd.f32 1e-06, %v503_v22 }
 0x3e4   :  { %958 = vlog2.f32 %v504_v23 }
 0x3e5   :  { %960 = vtanh.f32 %v400_v7 }
 0x3ee   :  { %v959_v28 = vpop.eup %958 }
 0x3ef   :  { %v506_v29 = vmul.f32 0.6931472, %v959_v28  ;;  %v961_v38 = vpop.eup %960 }
 0x3f1   :  { %v510_v31 = vsub.f32 %v509_v30, %v506_v29 }
 0x3f3   :  { %v514_v32 = vsel %vm513_vm1, %v510_v31, 0.0  ;;  %v521_v33 = vsel %vm520_vm4, %v510_v31, 0.0 }
 0x3f4   :  { %515 = vadd.xlane.f32.xlu0 %v514_v32 }
 0x3f8   :  { %522 = vadd.xlane.f32.xlu0 %v521_v33 }
 0x44e   :  { %v527_v34 = vpop.permute.xlu1 %526 }
 0x44f   :  { %v534_v39 = vsel %vm533_vm5, %v961_v38, %v527_v34 }
 0x452   :  { %v531_v36 = vpop.permute.xlu1 %530 }
 0x453   :  { %v536_v41 = vsel %vm535_vm6, %v534_v39, %v531_v36 }
 0x481   :  { %v516_v35 = vpop.xlane.xlu0 %515 }
 0x482   :  { %v560_v37 = vadd.f32 -3.675754, %v516_v35 }
 0x484   :  { %v538_v43 = vsel %vm537_vm7, %v536_v41, %v560_v37 }
 0x485   :  { %v523_v40 = vpop.xlane.xlu0 %522 }
 0x486   :  { %v561_v42 = vadd.f32 -3.675754, %v523_v40 }
 0x488   :  { %v540_v44 = vsel %vm539_vm8, %v538_v43, %v561_v42 }
 0x489   :  { %v542_v45 = vsel %vm541_vm9, %v540_v44, 0.0 }
 0x48a   :  { %543 = vst [vmem:[#allocation8] sm:$0xff] %v542_v45 }
 0x48b   :  { %1039 = shalt.err (!%p1036_p0)
}
 0x48c   :  { %s1040_s26 = scalar_lea.hbm %s1189_s3, 128 }
 0x48d   :  { %p1041_p1 = scmp.ne.s32.totalorder %s1189_s3, %s1040_s26  ;;  %p1044_p2 = scmp.lt.u32.totalorder %s1040_s26, %s1189_s3 }
 0x48f   :  { %p1046_p3 = pnand %p1044_p2, %p1041_p1 }
 0x491   :  { %1049 = shalt.err (!%p1046_p3)
}
 0x492   :  { %553 = dma.vmem_to_hbm [thread:$0]  %s551_s22, 128, %s1189_s3, [#allocation4]  }
 0x493   :  { %1054 = dma.done.wait [#allocation4], 128  }
 0x494   :  { %1055 = vsyncadd [#allocation4], 4294967168 }
 0x495   :  { %557 = vsyncpa [#allocation3], 1 }
 0x496   :  { %558 = vsyncpa [#allocation6], 1 }
 0x497   :  { %559 = vsyncpa [#allocation4], 1 }

</bundles_post_ra>
